<compile_context>
chip_gen: v7x
topology: tpu7x:2x2x1
jax: 0.10.0
libtpu: 0.0.40
codegen_flags: <defaults>
</compile_context>

<pallas_src>
import functools

import jax
import jax.numpy as jnp
from jax.experimental import pallas as pl
from jax.experimental.pallas import tpu as pltpu


FUSED_MAX_N = 512                         # single fused call per layer below this
XW_RESIDENT_MAX_BYTES = 4 * 1024 * 1024   # keep XW VMEM-resident if <= this


def _round_up(x, m):
    return ((x + m - 1) // m) * m


@functools.lru_cache(maxsize=None)
def _vmem_limit_bytes():
    """Per-generation VMEM budget: ~48 MiB on v7x (64 MiB VMEM per TC),
    64 MiB on v5e/v6e (128 MiB physical VMEM)."""
    try:
        cap = pltpu.get_tpu_info().vmem_capacity_bytes
    except Exception:  # query unavailable -> conservative default
        cap = 64 * 1024 * 1024
    return int(min(64 * 1024 * 1024, max(32 * 1024 * 1024, (cap * 3) // 4)))


def _pick_tiles(n):
    """Return (n_pad, tm, tk): padded node count, row tile, reduction tile."""
    if n <= FUSED_MAX_N:
        n_pad = max(_round_up(n, 128), 128)
        return n_pad, n_pad, n_pad          # fused single-tile path
    n_pad = _round_up(n, 1024)
    tm = 512                                # >= 2 row tiles -> megacore on v7x
    tk = 2048 if n_pad % 2048 == 0 else 1024
    return n_pad, tm, tk


# ---------------------------------------------------------------------------
# Kernel: feature transform  XW = X @ W  (tiled over node rows, bf16 out)
# ---------------------------------------------------------------------------
def xw_kernel(x_ref, w_ref, o_ref):
    o_ref[...] = jnp.dot(
        x_ref[...], w_ref[...], preferred_element_type=jnp.float32
    ).astype(o_ref.dtype)


# ---------------------------------------------------------------------------
# Kernel: fused small-graph layer  relu(A_hat @ (X @ W) + b)   (grid=(1,))
# ---------------------------------------------------------------------------
def gcn_fused_kernel(a_ref, x_ref, w_ref, b_ref, o_ref):
    xw = jnp.dot(x_ref[...], w_ref[...], preferred_element_type=jnp.float32)
    agg = jnp.dot(a_ref[...], xw.astype(jnp.bfloat16),
                  preferred_element_type=jnp.float32)
    o_ref[...] = jnp.maximum(agg + b_ref[...], 0.0).astype(o_ref.dtype)


# ---------------------------------------------------------------------------
# Kernel: tiled aggregation  relu(A_hat @ XW + b)
#   grid = (row tiles i [parallel], reduction tiles k [arbitrary])
#   XW VMEM-resident variant: XW block = full array, sliced with pl.ds.
# ---------------------------------------------------------------------------
def gcn_agg_resident_kernel(a_ref, xw_ref, b_ref, o_ref, acc_ref, *, tk):
    k = pl.program_id(1)

    @pl.when(k == 0)
    def _():
        acc_ref[...] = jnp.zeros_like(acc_ref)

    start = pl.multiple_of(k * tk, tk)
    acc_ref[...] += jnp.dot(a_ref[...], xw_ref[pl.ds(start, tk), :],
                            preferred_element_type=jnp.float32)

    @pl.when(k == pl.num_programs(1) - 1)
    def _():
        o_ref[...] = jnp.maximum(acc_ref[...] + b_ref[...], 0.0).astype(o_ref.dtype)


def gcn_agg_streamed_kernel(a_ref, xw_ref, b_ref, o_ref, acc_ref):
    k = pl.program_id(1)

    @pl.when(k == 0)
    def _():
        acc_ref[...] = jnp.zeros_like(acc_ref)

    acc_ref[...] += jnp.dot(a_ref[...], xw_ref[...],
                            preferred_element_type=jnp.float32)

    @pl.when(k == pl.num_programs(1) - 1)
    def _():
        o_ref[...] = jnp.maximum(acc_ref[...] + b_ref[...], 0.0).astype(o_ref.dtype)


# ---------------------------------------------------------------------------
# One GCNConv layer: relu(A_hat @ (X @ W) + b); dropout(eval) == identity
# ---------------------------------------------------------------------------
def gcn_layer(a_bf16, x, w, b, *, tm, tk, out_dtype):
    n_pad = a_bf16.shape[0]
    f_in = x.shape[1]
    f_out = w.shape[1]
    vmem_limit = _vmem_limit_bytes()

    if tm == n_pad and tk == n_pad:
        # ---- small-graph fused path: one call, everything VMEM-resident ----
        return pl.pallas_call(
            gcn_fused_kernel,
            out_shape=jax.ShapeDtypeStruct((n_pad, f_out), out_dtype),
            grid=(1,),
            in_specs=[
                pl.BlockSpec((n_pad, n_pad), lambda i: (0, 0)),   # A_hat bf16
                pl.BlockSpec((n_pad, f_in), lambda i: (0, 0)),    # X bf16
                pl.BlockSpec((f_in, f_out), lambda i: (0, 0)),    # W bf16
                pl.BlockSpec((1, f_out), lambda i: (0, 0)),       # bias f32
            ],
            out_specs=pl.BlockSpec((n_pad, f_out), lambda i: (0, 0)),
            compiler_params=pltpu.CompilerParams(
                dimension_semantics=("arbitrary",),
                vmem_limit_bytes=vmem_limit),
        )(a_bf16, x, w, b)

    # ---- XW = X @ W (hoisted out of the aggregation, once per layer) -------
    xw = pl.pallas_call(
        xw_kernel,
        out_shape=jax.ShapeDtypeStruct((n_pad, f_out), jnp.bfloat16),
        grid=(n_pad // tm,),
        in_specs=[
            pl.BlockSpec((tm, f_in), lambda i: (i, 0)),
            pl.BlockSpec((f_in, f_out), lambda i: (0, 0)),
        ],
        out_specs=pl.BlockSpec((tm, f_out), lambda i: (i, 0)),
        compiler_params=pltpu.CompilerParams(
            dimension_semantics=("parallel",),
            vmem_limit_bytes=vmem_limit),
    )(x, w)

    # ---- tiled A_hat @ XW with f32 accumulator, bias + ReLU epilogue -------
    resident = n_pad * f_out * 2 <= XW_RESIDENT_MAX_BYTES
    if resident:
        kernel = functools.partial(gcn_agg_resident_kernel, tk=tk)
        # full-array block + constant index_map -> DMA'd once, stays in VMEM
        xw_spec = pl.BlockSpec((n_pad, f_out), lambda i, k: (0, 0))
    else:
        kernel = gcn_agg_streamed_kernel
        xw_spec = pl.BlockSpec((tk, f_out), lambda i, k: (k, 0))

    return pl.pallas_call(
        kernel,
        out_shape=jax.ShapeDtypeStruct((n_pad, f_out), out_dtype),
        grid=(n_pad // tm, n_pad // tk),
        in_specs=[
            pl.BlockSpec((tm, tk), lambda i, k: (i, k)),      # A_hat tile bf16
            xw_spec,                                          # XW bf16
            pl.BlockSpec((1, f_out), lambda i, k: (0, 0)),    # bias f32
        ],
        out_specs=pl.BlockSpec((tm, f_out), lambda i, k: (i, 0)),
        scratch_shapes=[pltpu.VMEM((tm, f_out), jnp.float32)],
        compiler_params=pltpu.CompilerParams(
            dimension_semantics=("parallel", "arbitrary"),
            vmem_limit_bytes=vmem_limit),
    )(a_bf16, xw, b)


# ---------------------------------------------------------------------------
# Dense normalized adjacency (PyG GCNConv semantics: self-loops weight 1,
# symmetric D^{-1/2} A D^{-1/2}), built directly at padded size with the
# normalization folded into the scatter (single f32 N^2 temporary).
# ---------------------------------------------------------------------------
def build_normalized_adjacency(edge_index, edge_weight, num_nodes, n_pad):
    src = edge_index[0].astype(jnp.int32)
    dst = edge_index[1].astype(jnp.int32)
    loop = jnp.arange(num_nodes, dtype=jnp.int32)
    src = jnp.concatenate([src, loop])
    dst = jnp.concatenate([dst, loop])
    w = jnp.concatenate(
        [edge_weight.astype(jnp.float32), jnp.ones((num_nodes,), jnp.float32)])
    deg = jnp.zeros((n_pad,), jnp.float32).at[dst].add(w)
    dis = jnp.where(deg > 0, jax.lax.rsqrt(deg), 0.0)
    vals = w * dis[dst] * dis[src]          # fold normalization per edge, O(E)
    a_hat = jnp.zeros((n_pad, n_pad), jnp.float32).at[dst, src].add(vals)
    # padded rows/cols have deg=0 -> zero rows/cols; bf16 halves the dominant
    # HBM stream of the aggregation matmul.
    return a_hat.astype(jnp.bfloat16)
    # TODO(synk): on v7x, A_hat could be stored as fp8 (e4m3) to halve the
    # dominant stream again; for truly sparse graphs switch to block-sparse
    # aggregation (PrefetchScalarGridSpec with per-row-tile column-block lists).


def glorot(key, fan_in, fan_out):
    limit = jnp.sqrt(6.0 / (fan_in + fan_out))
    return jax.random.uniform(
        key, (fan_in, fan_out), jnp.float32, minval=-limit, maxval=limit)


@jax.jit
def gcn_forward(x, edge_index, edge_weight, params):
    n, f_in = x.shape
    hidden = params["w1"].shape[1]
    out_c = params["w2"].shape[1]

    n_pad, tm, tk = _pick_tiles(n)
    f_in_p = _round_up(f_in, 128)
    h_p = _round_up(hidden, 128)
    o_p = _round_up(out_c, 128)

    a_bf16 = build_normalized_adjacency(edge_index, edge_weight, n, n_pad)

    # zero-pad nodes and feature dims to lane width; bf16 MXU operands
    x_p = jnp.zeros((n_pad, f_in_p), jnp.bfloat16).at[:n, :f_in].set(
        x.astype(jnp.bfloat16))
    w1 = jnp.zeros((f_in_p, h_p), jnp.bfloat16).at[:f_in, :hidden].set(
        params["w1"].astype(jnp.bfloat16))
    b1 = jnp.zeros((1, h_p), jnp.float32).at[:, :hidden].set(
        params["b1"].reshape(1, -1))
    w2 = jnp.zeros((h_p, o_p), jnp.bfloat16).at[:hidden, :out_c].set(
        params["w2"].astype(jnp.bfloat16))
    b2 = jnp.zeros((1, o_p), jnp.float32).at[:, :out_c].set(
        params["b2"].reshape(1, -1))

    # layer 1: GCNConv -> relu -> dropout(p=0.2, eval) == identity  (bf16 act)
    h = gcn_layer(a_bf16, x_p, w1, b1, tm=tm, tk=tk, out_dtype=jnp.bfloat16)
    # layer 2: GCNConv -> relu -> dropout(p=0.2, eval) == identity  (f32 out)
    out = gcn_layer(a_bf16, h, w2, b2, tm=tm, tk=tk, out_dtype=jnp.float32)

    # TODO(synk): the original forward conditionally slices
    # `x[len(hier2label)+1:]` using undefined module-level globals
    # (`label`, `hier2label`); omitted here.
    return out[:n, :out_c]


# pure-JAX f32 reference for correctness checking
def gcn_reference(x, edge_index, edge_weight, params):
    n = x.shape[0]
    src = edge_index[0].astype(jnp.int32)
    dst = edge_index[1].astype(jnp.int32)
    loop = jnp.arange(n, dtype=jnp.int32)
    src = jnp.concatenate([src, loop])
    dst = jnp.concatenate([dst, loop])
    w = jnp.concatenate([edge_weight, jnp.ones((n,), jnp.float32)])
    a = jnp.zeros((n, n), jnp.float32).at[dst, src].add(w)
    deg = jnp.zeros((n,), jnp.float32).at[dst].add(w)
    dis = jnp.where(deg > 0, jax.lax.rsqrt(deg), 0.0)
    a_hat = dis[:, None] * a * dis[None, :]
    h = jnp.maximum(a_hat @ (x @ params["w1"]) + params["b1"], 0.0)
    return jnp.maximum(a_hat @ (h @ params["w2"]) + params["b2"], 0.0)


if __name__ == "__main__":
    key = jax.random.PRNGKey(0)

    def make_inputs(k, num_nodes, num_edges, f_in, hidden, f_out):
        k_x, k_ei, k_ew, k_w1, k_w2 = jax.random.split(k, 5)
        x = jax.random.normal(k_x, (num_nodes, f_in), jnp.float32)
        edge_index = jax.random.randint(
            k_ei, (2, num_edges), 0, num_nodes, dtype=jnp.int32)
        edge_weight = jax.random.uniform(
            k_ew, (num_edges,), jnp.float32, minval=0.1, maxval=1.0)
        params = {
            "w1": glorot(k_w1, f_in, hidden),
            "b1": jnp.zeros((hidden,), jnp.float32),
            "w2": glorot(k_w2, hidden, f_out),
            "b2": jnp.zeros((f_out,), jnp.float32),
        }
        return x, edge_index, edge_weight, params

    k1, k2 = jax.random.split(key)

    # small graph -> fused single-call-per-layer path
    x, ei, ew, params = make_inputs(k1, 16, 24, 8, 32, 16)
    out = gcn_forward(x, ei, ew, params)
    jax.block_until_ready(out)
    assert out.shape == (16, 16)
    ref = gcn_reference(x, ei, ew, params)
    assert jnp.allclose(out, ref, atol=5e-2, rtol=5e-2), "small-graph mismatch"

    # medium graph -> tiled path (row tiles, VMEM-resident XW, f32 accumulator)
    x, ei, ew, params = make_inputs(k2, 600, 1800, 8, 32, 16)
    out = gcn_forward(x, ei, ew, params)
    jax.block_until_ready(out)
    assert out.shape == (600, 16)
    ref = gcn_reference(x, ei, ew, params)
    assert jnp.allclose(out, ref, atol=5e-2, rtol=5e-2), "tiled-path mismatch"

    print("KERNEL_OK")
</pallas_src>

<mosaic_0001>
module attributes {stable_mosaic.version = 11 : i64} {
  func.func @gcn_fused_kernel(%arg0: i32, %arg1: memref<128x128xbf16, #tpu.memory_space<vmem>>, %arg2: memref<128x128xbf16, #tpu.memory_space<vmem>>, %arg3: memref<128x128xbf16, #tpu.memory_space<vmem>>, %arg4: memref<1x128xf32, #tpu.memory_space<vmem>>, %arg5: memref<128x128xf32, #tpu.memory_space<vmem>>) attributes {dimension_semantics = [#tpu.dimension_semantics<arbitrary>], iteration_bounds = array<i64: 1>, scalar_prefetch = 0 : i64, scratch_operands = 0 : i64, tpu.core_type = #tpu.core_type<tc>, window_params = [{pipeline_mode = #tpu.pipeline_mode<synchronous>, transform_indices = @transform_0, window_bounds = array<i64: 128, 128>}, {pipeline_mode = #tpu.pipeline_mode<synchronous>, transform_indices = @transform_1, window_bounds = array<i64: 128, 128>}, {pipeline_mode = #tpu.pipeline_mode<synchronous>, transform_indices = @transform_2, window_bounds = array<i64: 128, 128>}, {pipeline_mode = #tpu.pipeline_mode<synchronous>, transform_indices = @transform_3, window_bounds = array<i64: 1, 128>}, {pipeline_mode = #tpu.pipeline_mode<synchronous>, transform_indices = @transform_4, window_bounds = array<i64: 128, 128>}]} {
    %c0 = arith.constant 0 : index
    %c0_0 = arith.constant 0 : index
    %0 = vector.load %arg2[%c0, %c0_0] : memref<128x128xbf16, #tpu.memory_space<vmem>>, vector<128x128xbf16>
    %c0_1 = arith.constant 0 : index
    %c0_2 = arith.constant 0 : index
    %1 = vector.load %arg3[%c0_1, %c0_2] : memref<128x128xbf16, #tpu.memory_space<vmem>>, vector<128x128xbf16>
    %cst = arith.constant dense<0.000000e+00> : vector<128x128xf32>
    %2 = tpu.matmul %0, %1, %cst {dimension_numbers = #tpu.dot_dimension_numbers<[1], [0], [0], [1], [0, 0, 1, 1], [], []>} : vector<128x128xbf16>, vector<128x128xbf16>, vector<128x128xf32> -> vector<128x128xf32>
    %c0_3 = arith.constant 0 : index
    %c0_4 = arith.constant 0 : index
    %3 = vector.load %arg1[%c0_3, %c0_4] : memref<128x128xbf16, #tpu.memory_space<vmem>>, vector<128x128xbf16>
    %4 = arith.truncf %2 : vector<128x128xf32> to vector<128x128xbf16>
    %cst_5 = arith.constant dense<0.000000e+00> : vector<128x128xf32>
    %5 = tpu.matmul %3, %4, %cst_5 {dimension_numbers = #tpu.dot_dimension_numbers<[1], [0], [0], [1], [0, 0, 1, 1], [], []>} : vector<128x128xbf16>, vector<128x128xbf16>, vector<128x128xf32> -> vector<128x128xf32>
    %c0_6 = arith.constant 0 : index
    %c0_7 = arith.constant 0 : index
    %6 = vector.load %arg4[%c0_6, %c0_7] : memref<1x128xf32, #tpu.memory_space<vmem>>, vector<1x128xf32>
    %7 = vector.broadcast %6 : vector<1x128xf32> to vector<128x128xf32>
    %8 = arith.addf %5, %7 : vector<128x128xf32>
    %cst_8 = arith.constant 0.000000e+00 : f32
    %9 = vector.broadcast %cst_8 : f32 to vector<128x128xf32>
    %10 = arith.maximumf %8, %9 : vector<128x128xf32>
    %c0_9 = arith.constant 0 : index
    %c0_10 = arith.constant 0 : index
    %11 = vector.load %arg5[%c0_9, %c0_10] : memref<128x128xf32, #tpu.memory_space<vmem>>, vector<128x128xf32>
    tpu.vector_store %arg5[%c0_9, %c0_10], %10 {strides = array<i32>} : memref<128x128xf32, #tpu.memory_space<vmem>>, vector<128x128xf32>,
    return
  }
  func.func @transform_0(%arg0: i32) -> (i32, i32) {
    %c0_i32 = arith.constant 0 : i32
    %c0_i32_0 = arith.constant 0 : i32
    %c0_i32_1 = arith.constant 0 : i32
    return %c0_i32, %c0_i32_0 : i32, i32
  }
  func.func @transform_1(%arg0: i32) -> (i32, i32) {
    %c0_i32 = arith.constant 0 : i32
    %c0_i32_0 = arith.constant 0 : i32
    %c0_i32_1 = arith.constant 0 : i32
    return %c0_i32, %c0_i32_0 : i32, i32
  }
  func.func @transform_2(%arg0: i32) -> (i32, i32) {
    %c0_i32 = arith.constant 0 : i32
    %c0_i32_0 = arith.constant 0 : i32
    %c0_i32_1 = arith.constant 0 : i32
    return %c0_i32, %c0_i32_0 : i32, i32
  }
  func.func @transform_3(%arg0: i32) -> (i32, i32) {
    %c0_i32 = arith.constant 0 : i32
    %c0_i32_0 = arith.constant 0 : i32
    %c0_i32_1 = arith.constant 0 : i32
    return %c0_i32, %c0_i32_0 : i32, i32
  }
  func.func @transform_4(%arg0: i32) -> (i32, i32) {
    %c0_i32 = arith.constant 0 : i32
    %c0_i32_0 = arith.constant 0 : i32
    %c0_i32_1 = arith.constant 0 : i32
    return %c0_i32, %c0_i32_0 : i32, i32
  }
}

module attributes {stable_mosaic.version = 11 : i64} {
  func.func @gcn_fused_kernel(%arg0: i32, %arg1: memref<128x128xbf16, #tpu.memory_space<vmem>>, %arg2: memref<128x128xbf16, #tpu.memory_space<vmem>>, %arg3: memref<128x128xbf16, #tpu.memory_space<vmem>>, %arg4: memref<1x128xf32, #tpu.memory_space<vmem>>, %arg5: memref<128x128xbf16, #tpu.memory_space<vmem>>) attributes {dimension_semantics = [#tpu.dimension_semantics<arbitrary>], iteration_bounds = array<i64: 1>, scalar_prefetch = 0 : i64, scratch_operands = 0 : i64, tpu.core_type = #tpu.core_type<tc>, window_params = [{pipeline_mode = #tpu.pipeline_mode<synchronous>, transform_indices = @transform_0, window_bounds = array<i64: 128, 128>}, {pipeline_mode = #tpu.pipeline_mode<synchronous>, transform_indices = @transform_1, window_bounds = array<i64: 128, 128>}, {pipeline_mode = #tpu.pipeline_mode<synchronous>, transform_indices = @transform_2, window_bounds = array<i64: 128, 128>}, {pipeline_mode = #tpu.pipeline_mode<synchronous>, transform_indices = @transform_3, window_bounds = array<i64: 1, 128>}, {pipeline_mode = #tpu.pipeline_mode<synchronous>, transform_indices = @transform_4, window_bounds = array<i64: 128, 128>}]} {
    %c0 = arith.constant 0 : index
    %c0_0 = arith.constant 0 : index
    %0 = vector.load %arg2[%c0, %c0_0] : memref<128x128xbf16, #tpu.memory_space<vmem>>, vector<128x128xbf16>
    %c0_1 = arith.constant 0 : index
    %c0_2 = arith.constant 0 : index
    %1 = vector.load %arg3[%c0_1, %c0_2] : memref<128x128xbf16, #tpu.memory_space<vmem>>, vector<128x128xbf16>
    %cst = arith.constant dense<0.000000e+00> : vector<128x128xf32>
    %2 = tpu.matmul %0, %1, %cst {dimension_numbers = #tpu.dot_dimension_numbers<[1], [0], [0], [1], [0, 0, 1, 1], [], []>} : vector<128x128xbf16>, vector<128x128xbf16>, vector<128x128xf32> -> vector<128x128xf32>
    %c0_3 = arith.constant 0 : index
    %c0_4 = arith.constant 0 : index
    %3 = vector.load %arg1[%c0_3, %c0_4] : memref<128x128xbf16, #tpu.memory_space<vmem>>, vector<128x128xbf16>
    %4 = arith.truncf %2 : vector<128x128xf32> to vector<128x128xbf16>
    %cst_5 = arith.constant dense<0.000000e+00> : vector<128x128xf32>
    %5 = tpu.matmul %3, %4, %cst_5 {dimension_numbers = #tpu.dot_dimension_numbers<[1], [0], [0], [1], [0, 0, 1, 1], [], []>} : vector<128x128xbf16>, vector<128x128xbf16>, vector<128x128xf32> -> vector<128x128xf32>
    %c0_6 = arith.constant 0 : index
    %c0_7 = arith.constant 0 : index
    %6 = vector.load %arg4[%c0_6, %c0_7] : memref<1x128xf32, #tpu.memory_space<vmem>>, vector<1x128xf32>
    %7 = vector.broadcast %6 : vector<1x128xf32> to vector<128x128xf32>
    %8 = arith.addf %5, %7 : vector<128x128xf32>
    %cst_8 = arith.constant 0.000000e+00 : f32
    %9 = vector.broadcast %cst_8 : f32 to vector<128x128xf32>
    %10 = arith.maximumf %8, %9 : vector<128x128xf32>
    %11 = arith.truncf %10 : vector<128x128xf32> to vector<128x128xbf16>
    %c0_9 = arith.constant 0 : index
    %c0_10 = arith.constant 0 : index
    %12 = vector.load %arg5[%c0_9, %c0_10] : memref<128x128xbf16, #tpu.memory_space<vmem>>, vector<128x128xbf16>
    tpu.vector_store %arg5[%c0_9, %c0_10], %11 {strides = array<i32>} : memref<128x128xbf16, #tpu.memory_space<vmem>>, vector<128x128xbf16>,
    return
  }
  func.func @transform_0(%arg0: i32) -> (i32, i32) {
    %c0_i32 = arith.constant 0 : i32
    %c0_i32_0 = arith.constant 0 : i32
    %c0_i32_1 = arith.constant 0 : i32
    return %c0_i32, %c0_i32_0 : i32, i32
  }
  func.func @transform_1(%arg0: i32) -> (i32, i32) {
    %c0_i32 = arith.constant 0 : i32
    %c0_i32_0 = arith.constant 0 : i32
    %c0_i32_1 = arith.constant 0 : i32
    return %c0_i32, %c0_i32_0 : i32, i32
  }
  func.func @transform_2(%arg0: i32) -> (i32, i32) {
    %c0_i32 = arith.constant 0 : i32
    %c0_i32_0 = arith.constant 0 : i32
    %c0_i32_1 = arith.constant 0 : i32
    return %c0_i32, %c0_i32_0 : i32, i32
  }
  func.func @transform_3(%arg0: i32) -> (i32, i32) {
    %c0_i32 = arith.constant 0 : i32
    %c0_i32_0 = arith.constant 0 : i32
    %c0_i32_1 = arith.constant 0 : i32
    return %c0_i32, %c0_i32_0 : i32, i32
  }
  func.func @transform_4(%arg0: i32) -> (i32, i32) {
    %c0_i32 = arith.constant 0 : i32
    %c0_i32_0 = arith.constant 0 : i32
    %c0_i32_1 = arith.constant 0 : i32
    return %c0_i32, %c0_i32_0 : i32, i32
  }
}

</mosaic_0001>

<bundles_post_ra>
// kernel: gcn_forward.3
= control target key start
LH: loop header
LB: loop body
LE: loop exit
PB: predicated region body
PF: predicated region fallthrough
CT: control target
= control target key end

     0   :  { %s748_s2 = inlined_call_operand.vmem [shape: bf16[128,128], index: 2, kind: input, shape index: {}]   ;;  %s749_s1 = inlined_call_operand.vmem [shape: bf16[128,128], index: 1, kind: input, shape index: {}]   ;;  %s750_s0 = inlined_call_operand.vmem [shape: bf16[128,128], index: 0, kind: input, shape index: {}]   ;;  %s751_s3 = inlined_call_operand.vmem [shape: f32[1,128], index: 3, kind: input, shape index: {}]   ;;  %s752_s4 = inlined_call_operand.vmem [shape: f32[128,128], index: 4, kind: output, shape index: {}]  }
   0x1   :  { %v576_v0 = vld [vmem:[%s748_s2] sm:$0xff]   ;;  %v577_v1 = vld [vmem:[%s748_s2 + $0x8] sm:$0xff]   ;;  %v578_v2 = vld [vmem:[%s748_s2 + $0x10] sm:$0xff]  }
   0x2   :  { %512 = vmatprep.subr.bf16.mxu0 %v576_v0  ;;  %v579_v3 = vld [vmem:[%s748_s2 + $0x18] sm:$0xff]   ;;  %v584_v4 = vld [vmem:[%s749_s1] sm:$0xff]   ;;  %v581_v6 = vld [vmem:[%s748_s2 + $0x28] sm:$0xff]  }
   0x3   :  { %513 = vmatpush3.bf16.msra.mxu0 %v576_v0  ;;  %528 = vmatprep.mubr.bf16.mxu0 %v584_v4  ;;  %v580_v5 = vld [vmem:[%s748_s2 + $0x20] sm:$0xff]   ;;  %v582_v7 = vld [vmem:[%s748_s2 + $0x30] sm:$0xff]   ;;  %v583_v8 = vld [vmem:[%s748_s2 + $0x38] sm:$0xff]  }
   0x4   :  { %514 = vmatprep.subr.bf16.mxu0 %v577_v1  ;;  %v585_v9 = vld [vmem:[%s749_s1 + $0x8] sm:$0xff]   ;;  %v586_v10 = vld [vmem:[%s749_s1 + $0x10] sm:$0xff]   ;;  %v587_v11 = vld [vmem:[%s749_s1 + $0x18] sm:$0xff]  }
   0x5   :  { %v588_v12 = vld [vmem:[%s749_s1 + $0x20] sm:$0xff]   ;;  %v589_v13 = vld [vmem:[%s749_s1 + $0x28] sm:$0xff]   ;;  %v590_v14 = vld [vmem:[%s749_s1 + $0x30] sm:$0xff]  }
   0x6   :  { %v591_v15 = vld [vmem:[%s749_s1 + $0x38] sm:$0xff]   ;;  %v592_v16 = vld [vmem:[%s750_s0] sm:$0xff]   ;;  %v593_v41 = vld [vmem:[%s750_s0 + $0x8] sm:$0xff]  }
   0x7   :  { %515 = vmatpush3.bf16.msra.mxu0 %v577_v1  ;;  %560 = vmatprep.mubr.bf16.mxu1 %v592_v16  ;;  %v594_v42 = vld [vmem:[%s750_s0 + $0x10] sm:$0xff]   ;;  %v595_v43 = vld [vmem:[%s750_s0 + $0x18] sm:$0xff]   ;;  %v596_v44 = vld [vmem:[%s750_s0 + $0x20] sm:$0xff]  }
   0x8   :  { %516 = vmatprep.subr.bf16.mxu0 %v578_v2  ;;  %v597_v45 = vld [vmem:[%s750_s0 + $0x28] sm:$0xff]   ;;  %v598_v46 = vld [vmem:[%s750_s0 + $0x30] sm:$0xff]   ;;  %v599_v47 = vld [vmem:[%s750_s0 + $0x38] sm:$0xff]  }
   0x9   :  { %v471_v48 = vld [vmem:[%s751_s3] ss:$0 sm:$0xff] }
   0xb   :  { %517 = vmatpush3.bf16.msra.mxu0 %v578_v2 }
   0xc   :  { %518 = vmatprep.subr.bf16.mxu0 %v579_v3 }
   0xf   :  { %519 = vmatpush3.bf16.msra.mxu0 %v579_v3 }
  0x10   :  { %520 = vmatprep.subr.bf16.mxu0 %v580_v5 }
  0x13   :  { %521 = vmatpush3.bf16.msra.mxu0 %v580_v5 }
  0x14   :  { %522 = vmatprep.subr.bf16.mxu0 %v581_v6 }
  0x17   :  { %523 = vmatpush3.bf16.msra.mxu0 %v581_v6 }
  0x18   :  { %524 = vmatprep.subr.bf16.mxu0 %v582_v7 }
  0x1b   :  { %525 = vmatpush3.bf16.msra.mxu0 %v582_v7 }
  0x1c   :  { %526 = vmatprep.subr.bf16.mxu0 %v583_v8 }
  0x1f   :  { %527 = vmatpush3.bf16.msra.mxu0 %v583_v8 }
  0x22   :  { %529 = vmatmul.mubr.bf16.vlgmr.msra.gmra.mrb[0].mxu0 %v585_v9 }
  0x23   :  { %532 = vmatprep.mubr.bf16.mxu0 %v586_v10 }
  0x2a   :  { %533 = vmatmul.mubr.bf16.gmra.mrb[4].mxu0 %v587_v11 }
  0x2b   :  { %536 = vmatprep.mubr.bf16.mxu0 %v588_v12 }
  0x32   :  { %537 = vmatmul.mubr.bf16.gmra.mrb[8].mxu0 %v589_v13 }
  0x33   :  { %540 = vmatprep.mubr.bf16.mxu0 %v590_v14 }
  0x3a   :  { %541 = vmatmul.mubr.bf16.gmra.mrb[12].mxu0 %v591_v15 }
  0xf5   :  { %v530_v17 = vpop.f32.mrb[0].mxu0 }
  0xf6   :  { %v180_v18 = vpop.f32.mrb[1].mxu0 }
  0xf7   :  { %v531_v19 = vpop.f32.mrb[2].mxu0 }
  0xf8   :  { %v260_v20 = vpack.c.bf16 %v531_v19, %v530_v17  ;;  %v183_v21 = vpop.f32.mrb[3].mxu0 }
  0xf9   :  { %v259_v22 = vpack.c.bf16 %v183_v21, %v180_v18 }
  0xfb   :  { %544 = vmatprep.subr.bf16.mxu1 %v259_v22 }
  0xfc   :  { %545 = vmatpush3.bf16.msra.mxu1 %v259_v22 }
  0xfd   :  { %v534_v23 = vpop.f32.mrb[4].mxu0  ;;  %546 = vmatprep.subr.bf16.mxu1 %v260_v20 }
  0xfe   :  { %v196_v24 = vpop.f32.mrb[5].mxu0 }
  0xff   :  { %v535_v25 = vpop.f32.mrb[6].mxu0 }
 0x100   :  { %v262_v26 = vpack.c.bf16 %v535_v25, %v534_v23  ;;  %v199_v27 = vpop.f32.mrb[7].mxu0  ;;  %547 = vmatpush3.bf16.msra.mxu1 %v260_v20 }
 0x101   :  { %v261_v28 = vpack.c.bf16 %v199_v27, %v196_v24 }
 0x103   :  { %548 = vmatprep.subr.bf16.mxu1 %v261_v28 }
 0x104   :  { %549 = vmatpush3.bf16.msra.mxu1 %v261_v28 }
 0x105   :  { %v538_v29 = vpop.f32.mrb[8].mxu0  ;;  %550 = vmatprep.subr.bf16.mxu1 %v262_v26 }
 0x106   :  { %v212_v30 = vpop.f32.mrb[9].mxu0 }
 0x107   :  { %v539_v31 = vpop.f32.mrb[10].mxu0 }
 0x108   :  { %v264_v32 = vpack.c.bf16 %v539_v31, %v538_v29  ;;  %v215_v33 = vpop.f32.mrb[11].mxu0  ;;  %551 = vmatpush3.bf16.msra.mxu1 %v262_v26 }
 0x109   :  { %v263_v34 = vpack.c.bf16 %v215_v33, %v212_v30 }
 0x10b   :  { %552 = vmatprep.subr.bf16.mxu1 %v263_v34 }
 0x10c   :  { %553 = vmatpush3.bf16.msra.mxu1 %v263_v34 }
 0x10d   :  { %v542_v35 = vpop.f32.mrb[12].mxu0  ;;  %554 = vmatprep.subr.bf16.mxu1 %v264_v32 }
 0x10e   :  { %v228_v36 = vpop.f32.mrb[13].mxu0 }
 0x10f   :  { %v543_v37 = vpop.f32.mrb[14].mxu0 }
 0x110   :  { %v266_v38 = vpack.c.bf16 %v543_v37, %v542_v35  ;;  %v231_v39 = vpop.f32.mrb[15].mxu0  ;;  %555 = vmatpush3.bf16.msra.mxu1 %v264_v32 }
 0x111   :  { %v265_v40 = vpack.c.bf16 %v231_v39, %v228_v36 }
 0x113   :  { %556 = vmatprep.subr.bf16.mxu1 %v265_v40 }
 0x114   :  { %557 = vmatpush3.bf16.msra.mxu1 %v265_v40 }
 0x115   :  { %558 = vmatprep.subr.bf16.mxu1 %v266_v38 }
 0x118   :  { %559 = vmatpush3.bf16.msra.mxu1 %v266_v38 }
 0x11b   :  { %561 = vmatmul.mubr.bf16.vlgmr.msra.gmra.mrb[0].mxu1 %v593_v41 }
 0x11c   :  { %564 = vmatprep.mubr.bf16.mxu1 %v594_v42 }
 0x123   :  { %565 = vmatmul.mubr.bf16.gmra.mrb[4].mxu1 %v595_v43 }
 0x124   :  { %568 = vmatprep.mubr.bf16.mxu1 %v596_v44 }
 0x12b   :  { %569 = vmatmul.mubr.bf16.gmra.mrb[8].mxu1 %v597_v45 }
 0x12c   :  { %572 = vmatprep.mubr.bf16.mxu1 %v598_v46 }
 0x133   :  { %573 = vmatmul.mubr.bf16.gmra.mrb[12].mxu1 %v599_v47 }
 0x1ee   :  { %v562_v49 = vpop.f32.mrb[0].mxu1 }
 0x1ef   :  { %v365_v50 = vadd.f32 %v562_v49, %v471_v48  ;;  %v356_v51 = vpop.f32.mrb[1].mxu1 }
 0x1f0   :  { %v357_v52 = vadd.f32 %v471_v48, %v356_v51  ;;  %v563_v53 = vpop.f32.mrb[2].mxu1 }
 0x1f1   :  { %v421_v54 = vmax.f32 %v365_v50, 0.0  ;;  %v368_v55 = vadd.f32 %v563_v53, %v471_v48  ;;  %v359_v56 = vpop.f32.mrb[3].mxu1 }
 0x1f2   :  { %v419_v57 = vmax.f32 %v357_v52, 0.0  ;;  %v360_v58 = vadd.f32 %v471_v48, %v359_v56 }
 0x1f3   :  { %437 = vst [vmem:[%s752_s4 + $0x10] sm:$0xff] %v421_v54  ;;  %v422_v59 = vmax.f32 %v368_v55, 0.0 }
 0x1f4   :  { %435 = vst [vmem:[%s752_s4] sm:$0xff] %v419_v57  ;;  %v420_v60 = vmax.f32 %v360_v58, 0.0 }
 0x1f5   :  { %438 = vst [vmem:[%s752_s4 + $0x18] sm:$0xff] %v422_v59 }
 0x1f6   :  { %436 = vst [vmem:[%s752_s4 + $0x8] sm:$0xff] %v420_v60  ;;  %v566_v61 = vpop.f32.mrb[4].mxu1 }
 0x1f7   :  { %v381_v62 = vadd.f32 %v566_v61, %v471_v48  ;;  %v372_v63 = vpop.f32.mrb[5].mxu1 }
 0x1f8   :  { %v373_v0 = vadd.f32 %v471_v48, %v372_v63  ;;  %v567_v1 = vpop.f32.mrb[6].mxu1 }
 0x1f9   :  { %v425_v2 = vmax.f32 %v381_v62, 0.0  ;;  %v384_v3 = vadd.f32 %v567_v1, %v471_v48  ;;  %v375_v4 = vpop.f32.mrb[7].mxu1 }
 0x1fa   :  { %v423_v5 = vmax.f32 %v373_v0, 0.0  ;;  %v376_v6 = vadd.f32 %v471_v48, %v375_v4 }
 0x1fb   :  { %441 = vst [vmem:[%s752_s4 + $0x30] sm:$0xff] %v425_v2  ;;  %v426_v7 = vmax.f32 %v384_v3, 0.0 }
 0x1fc   :  { %439 = vst [vmem:[%s752_s4 + $0x20] sm:$0xff] %v423_v5  ;;  %v424_v8 = vmax.f32 %v376_v6, 0.0 }
 0x1fd   :  { %442 = vst [vmem:[%s752_s4 + $0x38] sm:$0xff] %v426_v7 }
 0x1fe   :  { %440 = vst [vmem:[%s752_s4 + $0x28] sm:$0xff] %v424_v8  ;;  %v570_v9 = vpop.f32.mrb[8].mxu1 }
 0x1ff   :  { %v397_v10 = vadd.f32 %v570_v9, %v471_v48  ;;  %v388_v11 = vpop.f32.mrb[9].mxu1 }
 0x200   :  { %v389_v12 = vadd.f32 %v471_v48, %v388_v11  ;;  %v571_v13 = vpop.f32.mrb[10].mxu1 }
 0x201   :  { %v429_v14 = vmax.f32 %v397_v10, 0.0  ;;  %v400_v15 = vadd.f32 %v571_v13, %v471_v48  ;;  %v391_v16 = vpop.f32.mrb[11].mxu1 }
 0x202   :  { %v427_v17 = vmax.f32 %v389_v12, 0.0  ;;  %v392_v18 = vadd.f32 %v471_v48, %v391_v16 }
 0x203   :  { %445 = vst [vmem:[%s752_s4 + $0x50] sm:$0xff] %v429_v14  ;;  %v430_v19 = vmax.f32 %v400_v15, 0.0 }
 0x204   :  { %443 = vst [vmem:[%s752_s4 + $0x40] sm:$0xff] %v427_v17  ;;  %v428_v20 = vmax.f32 %v392_v18, 0.0 }
 0x205   :  { %446 = vst [vmem:[%s752_s4 + $0x58] sm:$0xff] %v430_v19 }
 0x206   :  { %444 = vst [vmem:[%s752_s4 + $0x48] sm:$0xff] %v428_v20  ;;  %v574_v21 = vpop.f32.mrb[12].mxu1 }
 0x207   :  { %v413_v22 = vadd.f32 %v574_v21, %v471_v48  ;;  %v404_v23 = vpop.f32.mrb[13].mxu1 }
 0x208   :  { %v405_v24 = vadd.f32 %v471_v48, %v404_v23  ;;  %v575_v25 = vpop.f32.mrb[14].mxu1 }
 0x209   :  { %v433_v26 = vmax.f32 %v413_v22, 0.0  ;;  %v416_v27 = vadd.f32 %v575_v25, %v471_v48  ;;  %v407_v28 = vpop.f32.mrb[15].mxu1 }
 0x20a   :  { %v431_v29 = vmax.f32 %v405_v24, 0.0  ;;  %v408_v30 = vadd.f32 %v471_v48, %v407_v28 }
 0x20b   :  { %449 = vst [vmem:[%s752_s4 + $0x70] sm:$0xff] %v433_v26  ;;  %v434_v31 = vmax.f32 %v416_v27, 0.0 }
 0x20c   :  { %447 = vst [vmem:[%s752_s4 + $0x60] sm:$0xff] %v431_v29  ;;  %v432_v32 = vmax.f32 %v408_v30, 0.0 }
 0x20d   :  { %450 = vst [vmem:[%s752_s4 + $0x78] sm:$0xff] %v434_v31 }
 0x20e   :  { %448 = vst [vmem:[%s752_s4 + $0x68] sm:$0xff] %v432_v32 }

// kernel: gcn_forward.2
= control target key start
LH: loop header
LB: loop body
LE: loop exit
PB: predicated region body
PF: predicated region fallthrough
CT: control target
= control target key end

     0   :  { %s867_s2 = inlined_call_operand.vmem [shape: bf16[128,128], index: 2, kind: input, shape index: {}]   ;;  %s868_s1 = inlined_call_operand.vmem [shape: bf16[128,128], index: 1, kind: input, shape index: {}]   ;;  %s869_s0 = inlined_call_operand.vmem [shape: bf16[128,128], index: 0, kind: input, shape index: {}]   ;;  %s870_s3 = inlined_call_operand.vmem [shape: f32[1,128], index: 3, kind: input, shape index: {}]   ;;  %s871_s4 = inlined_call_operand.vmem [shape: bf16[128,128], index: 4, kind: output, shape index: {}]  }
   0x1   :  { %v719_v0 = vld [vmem:[%s867_s2] sm:$0xff]   ;;  %v720_v1 = vld [vmem:[%s867_s2 + $0x8] sm:$0xff]   ;;  %v721_v2 = vld [vmem:[%s867_s2 + $0x10] sm:$0xff]  }
   0x2   :  { %655 = vmatprep.subr.bf16.mxu0 %v719_v0  ;;  %v722_v3 = vld [vmem:[%s867_s2 + $0x18] sm:$0xff]   ;;  %v727_v4 = vld [vmem:[%s868_s1] sm:$0xff]   ;;  %v724_v6 = vld [vmem:[%s867_s2 + $0x28] sm:$0xff]  }
   0x3   :  { %656 = vmatpush3.bf16.msra.mxu0 %v719_v0  ;;  %671 = vmatprep.mubr.bf16.mxu0 %v727_v4  ;;  %v723_v5 = vld [vmem:[%s867_s2 + $0x20] sm:$0xff]   ;;  %v725_v7 = vld [vmem:[%s867_s2 + $0x30] sm:$0xff]   ;;  %v726_v8 = vld [vmem:[%s867_s2 + $0x38] sm:$0xff]  }
   0x4   :  { %657 = vmatprep.subr.bf16.mxu0 %v720_v1  ;;  %v728_v9 = vld [vmem:[%s868_s1 + $0x8] sm:$0xff]   ;;  %v729_v10 = vld [vmem:[%s868_s1 + $0x10] sm:$0xff]   ;;  %v730_v11 = vld [vmem:[%s868_s1 + $0x18] sm:$0xff]  }
   0x5   :  { %v731_v12 = vld [vmem:[%s868_s1 + $0x20] sm:$0xff]   ;;  %v732_v13 = vld [vmem:[%s868_s1 + $0x28] sm:$0xff]   ;;  %v733_v14 = vld [vmem:[%s868_s1 + $0x30] sm:$0xff]  }
   0x6   :  { %v734_v15 = vld [vmem:[%s868_s1 + $0x38] sm:$0xff]   ;;  %v735_v16 = vld [vmem:[%s869_s0] sm:$0xff]   ;;  %v736_v41 = vld [vmem:[%s869_s0 + $0x8] sm:$0xff]  }
   0x7   :  { %658 = vmatpush3.bf16.msra.mxu0 %v720_v1  ;;  %703 = vmatprep.mubr.bf16.mxu1 %v735_v16  ;;  %v737_v42 = vld [vmem:[%s869_s0 + $0x10] sm:$0xff]   ;;  %v738_v43 = vld [vmem:[%s869_s0 + $0x18] sm:$0xff]   ;;  %v739_v44 = vld [vmem:[%s869_s0 + $0x20] sm:$0xff]  }
   0x8   :  { %659 = vmatprep.subr.bf16.mxu0 %v721_v2  ;;  %v740_v45 = vld [vmem:[%s869_s0 + $0x28] sm:$0xff]   ;;  %v741_v46 = vld [vmem:[%s869_s0 + $0x30] sm:$0xff]   ;;  %v742_v47 = vld [vmem:[%s869_s0 + $0x38] sm:$0xff]  }
   0x9   :  { %v535_v48 = vld [vmem:[%s870_s3] ss:$0 sm:$0xff] }
   0xb   :  { %660 = vmatpush3.bf16.msra.mxu0 %v721_v2 }
   0xc   :  { %661 = vmatprep.subr.bf16.mxu0 %v722_v3 }
   0xf   :  { %662 = vmatpush3.bf16.msra.mxu0 %v722_v3 }
  0x10   :  { %663 = vmatprep.subr.bf16.mxu0 %v723_v5 }
  0x13   :  { %664 = vmatpush3.bf16.msra.mxu0 %v723_v5 }
  0x14   :  { %665 = vmatprep.subr.bf16.mxu0 %v724_v6 }
  0x17   :  { %666 = vmatpush3.bf16.msra.mxu0 %v724_v6 }
  0x18   :  { %667 = vmatprep.subr.bf16.mxu0 %v725_v7 }
  0x1b   :  { %668 = vmatpush3.bf16.msra.mxu0 %v725_v7 }
  0x1c   :  { %669 = vmatprep.subr.bf16.mxu0 %v726_v8 }
  0x1f   :  { %670 = vmatpush3.bf16.msra.mxu0 %v726_v8 }
  0x22   :  { %672 = vmatmul.mubr.bf16.vlgmr.msra.gmra.mrb[0].mxu0 %v728_v9 }
  0x23   :  { %675 = vmatprep.mubr.bf16.mxu0 %v729_v10 }
  0x2a   :  { %676 = vmatmul.mubr.bf16.gmra.mrb[4].mxu0 %v730_v11 }
  0x2b   :  { %679 = vmatprep.mubr.bf16.mxu0 %v731_v12 }
  0x32   :  { %680 = vmatmul.mubr.bf16.gmra.mrb[8].mxu0 %v732_v13 }
  0x33   :  { %683 = vmatprep.mubr.bf16.mxu0 %v733_v14 }
  0x3a   :  { %684 = vmatmul.mubr.bf16.gmra.mrb[12].mxu0 %v734_v15 }
  0xf5   :  { %v673_v17 = vpop.f32.mrb[0].mxu0 }
  0xf6   :  { %v180_v18 = vpop.f32.mrb[1].mxu0 }
  0xf7   :  { %v674_v19 = vpop.f32.mrb[2].mxu0 }
  0xf8   :  { %v260_v20 = vpack.c.bf16 %v674_v19, %v673_v17  ;;  %v183_v21 = vpop.f32.mrb[3].mxu0 }
  0xf9   :  { %v259_v22 = vpack.c.bf16 %v183_v21, %v180_v18 }
  0xfb   :  { %687 = vmatprep.subr.bf16.mxu1 %v259_v22 }
  0xfc   :  { %688 = vmatpush3.bf16.msra.mxu1 %v259_v22 }
  0xfd   :  { %v677_v23 = vpop.f32.mrb[4].mxu0  ;;  %689 = vmatprep.subr.bf16.mxu1 %v260_v20 }
  0xfe   :  { %v196_v24 = vpop.f32.mrb[5].mxu0 }
  0xff   :  { %v678_v25 = vpop.f32.mrb[6].mxu0 }
 0x100   :  { %v262_v26 = vpack.c.bf16 %v678_v25, %v677_v23  ;;  %v199_v27 = vpop.f32.mrb[7].mxu0  ;;  %690 = vmatpush3.bf16.msra.mxu1 %v260_v20 }
 0x101   :  { %v261_v28 = vpack.c.bf16 %v199_v27, %v196_v24 }
 0x103   :  { %691 = vmatprep.subr.bf16.mxu1 %v261_v28 }
 0x104   :  { %692 = vmatpush3.bf16.msra.mxu1 %v261_v28 }
 0x105   :  { %v681_v29 = vpop.f32.mrb[8].mxu0  ;;  %693 = vmatprep.subr.bf16.mxu1 %v262_v26 }
 0x106   :  { %v212_v30 = vpop.f32.mrb[9].mxu0 }
 0x107   :  { %v682_v31 = vpop.f32.mrb[10].mxu0 }
 0x108   :  { %v264_v32 = vpack.c.bf16 %v682_v31, %v681_v29  ;;  %v215_v33 = vpop.f32.mrb[11].mxu0  ;;  %694 = vmatpush3.bf16.msra.mxu1 %v262_v26 }
 0x109   :  { %v263_v34 = vpack.c.bf16 %v215_v33, %v212_v30 }
 0x10b   :  { %695 = vmatprep.subr.bf16.mxu1 %v263_v34 }
 0x10c   :  { %696 = vmatpush3.bf16.msra.mxu1 %v263_v34 }
 0x10d   :  { %v685_v35 = vpop.f32.mrb[12].mxu0  ;;  %697 = vmatprep.subr.bf16.mxu1 %v264_v32 }
 0x10e   :  { %v228_v36 = vpop.f32.mrb[13].mxu0 }
 0x10f   :  { %v686_v37 = vpop.f32.mrb[14].mxu0 }
 0x110   :  { %v266_v38 = vpack.c.bf16 %v686_v37, %v685_v35  ;;  %v231_v39 = vpop.f32.mrb[15].mxu0  ;;  %698 = vmatpush3.bf16.msra.mxu1 %v264_v32 }
 0x111   :  { %v265_v40 = vpack.c.bf16 %v231_v39, %v228_v36 }
 0x113   :  { %699 = vmatprep.subr.bf16.mxu1 %v265_v40 }
 0x114   :  { %700 = vmatpush3.bf16.msra.mxu1 %v265_v40 }
 0x115   :  { %701 = vmatprep.subr.bf16.mxu1 %v266_v38 }
 0x118   :  { %702 = vmatpush3.bf16.msra.mxu1 %v266_v38 }
 0x11b   :  { %704 = vmatmul.mubr.bf16.vlgmr.msra.gmra.mrb[0].mxu1 %v736_v41 }
 0x11c   :  { %707 = vmatprep.mubr.bf16.mxu1 %v737_v42 }
 0x123   :  { %708 = vmatmul.mubr.bf16.gmra.mrb[4].mxu1 %v738_v43 }
 0x124   :  { %711 = vmatprep.mubr.bf16.mxu1 %v739_v44 }
 0x12b   :  { %712 = vmatmul.mubr.bf16.gmra.mrb[8].mxu1 %v740_v45 }
 0x12c   :  { %715 = vmatprep.mubr.bf16.mxu1 %v741_v46 }
 0x133   :  { %716 = vmatmul.mubr.bf16.gmra.mrb[12].mxu1 %v742_v47 }
 0x1ee   :  { %v705_v49 = vpop.f32.mrb[0].mxu1 }
 0x1ef   :  { %v365_v50 = vadd.f32 %v705_v49, %v535_v48  ;;  %v356_v51 = vpop.f32.mrb[1].mxu1 }
 0x1f0   :  { %v357_v52 = vadd.f32 %v535_v48, %v356_v51  ;;  %v706_v53 = vpop.f32.mrb[2].mxu1 }
 0x1f1   :  { %v368_v54 = vadd.f32 %v706_v53, %v535_v48  ;;  %v359_v55 = vpop.f32.mrb[3].mxu1  ;;  %v421_v57 = vmax.f32 %v365_v50, 0.0 }
 0x1f2   :  { %v360_v56 = vadd.f32 %v535_v48, %v359_v55  ;;  %v419_v59 = vmax.f32 %v357_v52, 0.0 }
 0x1f3   :  { %v422_v58 = vmax.f32 %v368_v54, 0.0 }
 0x1f4   :  { %v420_v60 = vmax.f32 %v360_v56, 0.0 }
 0x1f5   :  { %v584_v61 = vpack.c.bf16 %v422_v58, %v421_v57 }
 0x1f6   :  { %v579_v62 = vpack.c.bf16 %v420_v60, %v419_v59  ;;  %v709_v63 = vpop.f32.mrb[4].mxu1 }
 0x1f7   :  { %616 = vst [vmem:[%s871_s4 + $0x8] sm:$0xff] %v584_v61   ;;  %v381_v0 = vadd.f32 %v709_v63, %v535_v48  ;;  %v372_v1 = vpop.f32.mrb[5].mxu1 }
 0x1f8   :  { %580 = vst [vmem:[%s871_s4] sm:$0xff] %v579_v62   ;;  %v373_v2 = vadd.f32 %v535_v48, %v372_v1  ;;  %v710_v3 = vpop.f32.mrb[6].mxu1 }
 0x1f9   :  { %v384_v4 = vadd.f32 %v710_v3, %v535_v48  ;;  %v375_v5 = vpop.f32.mrb[7].mxu1  ;;  %v425_v7 = vmax.f32 %v381_v0, 0.0 }
 0x1fa   :  { %v376_v6 = vadd.f32 %v535_v48, %v375_v5  ;;  %v423_v9 = vmax.f32 %v373_v2, 0.0 }
 0x1fb   :  { %v426_v8 = vmax.f32 %v384_v4, 0.0 }
 0x1fc   :  { %v424_v10 = vmax.f32 %v376_v6, 0.0 }
 0x1fd   :  { %v594_v11 = vpack.c.bf16 %v426_v8, %v425_v7 }
 0x1fe   :  { %v589_v12 = vpack.c.bf16 %v424_v10, %v423_v9  ;;  %v713_v13 = vpop.f32.mrb[8].mxu1 }
 0x1ff   :  { %618 = vst [vmem:[%s871_s4 + $0x18] sm:$0xff] %v594_v11   ;;  %v397_v14 = vadd.f32 %v713_v13, %v535_v48  ;;  %v388_v15 = vpop.f32.mrb[9].mxu1 }
 0x200   :  { %617 = vst [vmem:[%s871_s4 + $0x10] sm:$0xff] %v589_v12   ;;  %v389_v16 = vadd.f32 %v535_v48, %v388_v15  ;;  %v714_v17 = vpop.f32.mrb[10].mxu1 }
 0x201   :  { %v400_v18 = vadd.f32 %v714_v17, %v535_v48  ;;  %v391_v19 = vpop.f32.mrb[11].mxu1  ;;  %v429_v21 = vmax.f32 %v397_v14, 0.0 }
 0x202   :  { %v392_v20 = vadd.f32 %v535_v48, %v391_v19  ;;  %v427_v23 = vmax.f32 %v389_v16, 0.0 }
 0x203   :  { %v430_v22 = vmax.f32 %v400_v18, 0.0 }
 0x204   :  { %v428_v24 = vmax.f32 %v392_v20, 0.0 }
 0x205   :  { %v604_v25 = vpack.c.bf16 %v430_v22, %v429_v21 }
 0x206   :  { %v599_v26 = vpack.c.bf16 %v428_v24, %v427_v23  ;;  %v717_v27 = vpop.f32.mrb[12].mxu1 }
 0x207   :  { %620 = vst [vmem:[%s871_s4 + $0x28] sm:$0xff] %v604_v25   ;;  %v413_v28 = vadd.f32 %v717_v27, %v535_v48  ;;  %v404_v29 = vpop.f32.mrb[13].mxu1 }
 0x208   :  { %619 = vst [vmem:[%s871_s4 + $0x20] sm:$0xff] %v599_v26   ;;  %v405_v30 = vadd.f32 %v535_v48, %v404_v29  ;;  %v718_v31 = vpop.f32.mrb[14].mxu1 }
 0x209   :  { %v416_v32 = vadd.f32 %v718_v31, %v535_v48  ;;  %v407_v33 = vpop.f32.mrb[15].mxu1  ;;  %v433_v35 = vmax.f32 %v413_v28, 0.0 }
 0x20a   :  { %v408_v34 = vadd.f32 %v535_v48, %v407_v33  ;;  %v431_v37 = vmax.f32 %v405_v30, 0.0 }
 0x20b   :  { %v434_v36 = vmax.f32 %v416_v32, 0.0 }
 0x20c   :  { %v432_v38 = vmax.f32 %v408_v34, 0.0 }
 0x20d   :  { %v614_v39 = vpack.c.bf16 %v434_v36, %v433_v35 }
 0x20e   :  { %v609_v40 = vpack.c.bf16 %v432_v38, %v431_v37 }
 0x20f   :  { %622 = vst [vmem:[%s871_s4 + $0x38] sm:$0xff] %v614_v39  }
 0x210   :  { %621 = vst [vmem:[%s871_s4 + $0x30] sm:$0xff] %v609_v40  }

</bundles_post_ra>
